<compile_context>
chip_gen: v7x
topology: tpu7x:2x2x1
jax: 0.10.0
libtpu: 0.0.40
codegen_flags: <defaults>
</compile_context>

<pallas_src>
import jax
import jax.numpy as jnp
import numpy as np
from jax.experimental import pallas as pl
from jax.experimental.pallas import tpu as pltpu

_SUB = 8     # f32 sublane count
_LANE = 128  # lane width


def _round_up(x, m):
    return (x + m - 1) // m * m


def _graphsage_kernel(src_ref, dst_ref, lo_ref, hi_ref,   # SMEM (scalar prefetch)
                      nh_ref,                              # VMEM (Npad, Dpad) full node table
                      w1s_ref, w1a_ref, b1_ref,            # VMEM (Dpad,Hpad),(Dpad,Hpad),(1,Hpad)
                      w2_ref, b2_ref,                      # VMEM (Hpad,Opad),(1,Opad)
                      out_ref,                             # VMEM (TN, Opad)
                      acc_ref, cnt_ref):                   # scratch VMEM (TN,Dpad),(TN,1)
    i = pl.program_id(0)
    tn = acc_ref.shape[0]
    row0 = i * tn

    # Per-tile accumulators (zeroed every grid step -> safe under "parallel").
    acc_ref[...] = jnp.zeros_like(acc_ref)
    cnt_ref[...] = jnp.zeros_like(cnt_ref)

    # Hoisted iota (JAX does not CSE broadcast_in_dim inside the loop).
    sub_rows = jax.lax.broadcasted_iota(jnp.int32, (_SUB, 1), 0)    # (8, 1)

    def edge_body(e, carry):
        s = src_ref[e]
        d = dst_ref[e]
        # Gather nh[s]: aligned 8-row group load + masked sublane reduce (XLU).
        sbase = pl.multiple_of((s >> 3) * _SUB, _SUB)
        grp = nh_ref[pl.ds(sbase, _SUB), :]                          # (8, Dpad)
        msg = jnp.sum(jnp.where(sub_rows == (s & 7), grp, 0.0),
                      axis=0, keepdims=True)                         # (1, Dpad)
        # Group-granular scatter-add: only the destination row's 8-row group is
        # RMW'd.  Edges in [lo, hi) are guaranteed in-tile (dst-sorted ranges),
        # so no per-edge branch is needed.
        local = d - row0
        dbase = pl.multiple_of((local >> 3) * _SUB, _SUB)
        hit = sub_rows == (local & 7)                                # (8, 1)
        acc_ref[pl.ds(dbase, _SUB), :] = (acc_ref[pl.ds(dbase, _SUB), :]
                                          + jnp.where(hit, msg, 0.0))
        cnt_ref[pl.ds(dbase, _SUB), :] = (cnt_ref[pl.ds(dbase, _SUB), :]
                                          + jnp.where(hit, 1.0, 0.0))
        return carry

    # Walk only this tile's edge window (from the wrapper-side dst sort).
    jax.lax.fori_loop(lo_ref[i], hi_ref[i], edge_body, 0)

    # scatter_mean semantics (empty destination -> 0); exact divide is cheap
    # and off the critical path.
    agg = acc_ref[...] / jnp.maximum(cnt_ref[...], 1.0)              # (TN, Dpad)

    # Self term: this tile's rows sliced from the resident table (no duplicate
    # per-tile DMA / double buffer).
    self_rows = nh_ref[pl.ds(pl.multiple_of(row0, _SUB), tn), :]     # (TN, Dpad)

    # MLP on cat([nh, agg]) without the concat: split-w1 trick, f32 MXU acc.
    h = (jnp.dot(self_rows, w1s_ref[...], preferred_element_type=jnp.float32)
         + jnp.dot(agg, w1a_ref[...], preferred_element_type=jnp.float32)
         + b1_ref[...])
    h = jnp.maximum(h, 0.0)
    out = jnp.dot(h, w2_ref[...], preferred_element_type=jnp.float32) + b2_ref[...]
    out_ref[...] = out.astype(out_ref.dtype)


def graphsage_layer(nh, eh, edge_index, params, *, node_tile=256):
    """nh: (N, Din) f32, eh: (E, De) f32, edge_index: (2, E) int, params = (w1,b1,w2,b2)."""
    w1, b1, w2, b2 = params
    N, Din = nh.shape
    H = w1.shape[1]
    Dout = w2.shape[1]

    # Lane-pad feature dims, sublane/tile-pad the node dim.
    Dpad = _round_up(Din, _LANE)
    Hpad = _round_up(H, _LANE)
    Opad = _round_up(Dout, _LANE)
    TN = min(node_tile, _round_up(N, _SUB))
    Npad = _round_up(N, TN)
    num_tiles = Npad // TN

    f32 = jnp.float32
    nh_p = jnp.zeros((Npad, Dpad), f32).at[:N, :Din].set(nh.astype(f32))

    w1 = w1.astype(f32)
    w1s = jnp.zeros((Dpad, Hpad), f32).at[:Din, :H].set(w1[:Din])    # multiplies nh
    w1a = jnp.zeros((Dpad, Hpad), f32).at[:Din, :H].set(w1[Din:])    # multiplies agg
    b1_p = jnp.zeros((1, Hpad), f32).at[:, :H].set(jnp.reshape(b1.astype(f32), (1, -1)))
    w2_p = jnp.zeros((Hpad, Opad), f32).at[:H, :Dout].set(w2.astype(f32))
    b2_p = jnp.zeros((1, Opad), f32).at[:, :Dout].set(jnp.reshape(b2.astype(f32), (1, -1)))

    src = edge_index[0].astype(jnp.int32)
    dst = edge_index[1].astype(jnp.int32)

    # Sort edges by destination and build per-node-tile edge ranges so each
    # grid step only loops over its own edges.
    order = jnp.argsort(dst)
    src_s = src[order]
    dst_s = dst[order]
    boundaries = jnp.arange(num_tiles + 1, dtype=jnp.int32) * TN
    edge_ptr = jnp.searchsorted(dst_s, boundaries, side='left').astype(jnp.int32)
    tile_lo = edge_ptr[:-1]
    tile_hi = edge_ptr[1:]
    # TODO(synk): for multi-million-edge graphs the (E,) SMEM prefetch arrays
    #             must be streamed in chunks instead of fully prefetched.

    grid_spec = pltpu.PrefetchScalarGridSpec(
        num_scalar_prefetch=4,                 # src, dst, tile_lo, tile_hi -> SMEM
        grid=(num_tiles,),                     # node tiles
        in_specs=[
            pl.BlockSpec((Npad, Dpad), lambda i, src, dst, lo, hi: (0, 0)),
            pl.BlockSpec((Dpad, Hpad), lambda i, src, dst, lo, hi: (0, 0)),
            pl.BlockSpec((Dpad, Hpad), lambda i, src, dst, lo, hi: (0, 0)),
            pl.BlockSpec((1, Hpad),    lambda i, src, dst, lo, hi: (0, 0)),
            pl.BlockSpec((Hpad, Opad), lambda i, src, dst, lo, hi: (0, 0)),
            pl.BlockSpec((1, Opad),    lambda i, src, dst, lo, hi: (0, 0)),
        ],
        out_specs=pl.BlockSpec((TN, Opad), lambda i, src, dst, lo, hi: (i, 0)),
        scratch_shapes=[
            pltpu.VMEM((TN, Dpad), jnp.float32),   # aggregation sum accumulator
            pltpu.VMEM((TN, 1), jnp.float32),      # in-degree count
        ],
    )

    out_padded = pl.pallas_call(
        _graphsage_kernel,
        out_shape=jax.ShapeDtypeStruct((Npad, Opad), jnp.float32),
        grid_spec=grid_spec,
        compiler_params=pltpu.CompilerParams(
            dimension_semantics=("parallel",),     # node tiles are independent
            vmem_limit_bytes=48 * 1024 * 1024,     # headroom under v7x's 64 MiB VMEM
        ),
    )(src_s, dst_s, tile_lo, tile_hi, nh_p, w1s, w1a, b1_p, w2_p, b2_p)

    n_h = out_padded[:N, :Dout]
    e_h = eh                                       # passed through unchanged
    return n_h, e_h


def _reference(nh, eh, edge_index, params):
    src, dst = edge_index[0], edge_index[1]
    N = nh.shape[0]
    msg = nh[src]
    agg_sum = jax.ops.segment_sum(msg, dst, num_segments=N)
    cnt = jax.ops.segment_sum(jnp.ones((src.shape[0],), jnp.float32), dst,
                              num_segments=N)[:, None]
    agg = agg_sum / jnp.maximum(cnt, 1.0)
    cat = jnp.concatenate([nh, agg], axis=-1)
    w1, b1, w2, b2 = params
    h = jnp.maximum(cat @ w1 + b1, 0.0)
    return h @ w2 + b2, eh


if __name__ == "__main__":
    # Small shapes consistent with the module.
    N, E = 16, 32          # nodes, edges
    Din, De = 8, 8         # node / edge feature dims
    H, Dout = 32, 16       # hidden_dim, output_dim

    key = jax.random.PRNGKey(0)
    k_nh, k_eh, k_src, k_dst, k_w1, k_w2 = jax.random.split(key, 6)

    nh = jax.random.normal(k_nh, (N, Din), jnp.float32)
    eh = jax.random.normal(k_eh, (E, De), jnp.float32)
    src = jax.random.randint(k_src, (E,), 0, N, jnp.int32)
    dst = jax.random.randint(k_dst, (E,), 0, N, jnp.int32)
    edge_index = jnp.stack([src, dst], axis=0)

    # Deterministic parameter init (synthetic, not a checkpoint).
    w1 = jax.random.normal(k_w1, (2 * Din, H), jnp.float32) * 0.1
    b1 = jnp.zeros((1, H), jnp.float32)
    w2 = jax.random.normal(k_w2, (H, Dout), jnp.float32) * 0.1
    b2 = jnp.zeros((1, Dout), jnp.float32)
    params = (w1, b1, w2, b2)

    n_h, e_h = graphsage_layer(nh, eh, edge_index, params)
    jax.block_until_ready((n_h, e_h))

    ref_nh, ref_eh = _reference(nh, eh, edge_index, params)
    # Tolerance covers f32 MXU accumulation-order differences (mean divide is exact).
    assert np.allclose(np.asarray(n_h), np.asarray(ref_nh), atol=2e-3, rtol=2e-3)
    assert np.allclose(np.asarray(e_h), np.asarray(ref_eh))

    print("KERNEL_OK")
</pallas_src>

<mosaic_0001>
module attributes {stable_mosaic.version = 11 : i64} {
  func.func @_graphsage_kernel(%arg0: i32, %arg1: memref<32xi32, #tpu.memory_space<smem>>, %arg2: memref<32xi32, #tpu.memory_space<smem>>, %arg3: memref<1xi32, #tpu.memory_space<smem>>, %arg4: memref<1xi32, #tpu.memory_space<smem>>, %arg5: memref<16x128xf32, #tpu.memory_space<vmem>>, %arg6: memref<128x128xf32, #tpu.memory_space<vmem>>, %arg7: memref<128x128xf32, #tpu.memory_space<vmem>>, %arg8: memref<1x128xf32, #tpu.memory_space<vmem>>, %arg9: memref<128x128xf32, #tpu.memory_space<vmem>>, %arg10: memref<1x128xf32, #tpu.memory_space<vmem>>, %arg11: memref<16x128xf32, #tpu.memory_space<vmem>>, %arg12: memref<16x128xf32, #tpu.memory_space<vmem>>, %arg13: memref<16x1xf32, #tpu.memory_space<vmem>>) attributes {dimension_semantics = [#tpu.dimension_semantics<parallel>], iteration_bounds = array<i64: 1>, scalar_prefetch = 4 : i64, scratch_operands = 2 : i64, tpu.core_type = #tpu.core_type<tc>, window_params = [{pipeline_mode = #tpu.pipeline_mode<synchronous>, transform_indices = @transform_0, window_bounds = array<i64: 16, 128>}, {pipeline_mode = #tpu.pipeline_mode<synchronous>, transform_indices = @transform_1, window_bounds = array<i64: 128, 128>}, {pipeline_mode = #tpu.pipeline_mode<synchronous>, transform_indices = @transform_2, window_bounds = array<i64: 128, 128>}, {pipeline_mode = #tpu.pipeline_mode<synchronous>, transform_indices = @transform_3, window_bounds = array<i64: 1, 128>}, {pipeline_mode = #tpu.pipeline_mode<synchronous>, transform_indices = @transform_4, window_bounds = array<i64: 128, 128>}, {pipeline_mode = #tpu.pipeline_mode<synchronous>, transform_indices = @transform_5, window_bounds = array<i64: 1, 128>}, {transform_indices = @transform_6, window_bounds = array<i64: 16, 128>}]} {
    %c16_i32 = arith.constant 16 : i32
    %0 = arith.muli %arg0, %c16_i32 : i32
    %cst = arith.constant 0.000000e+00 : f32
    %1 = vector.broadcast %cst : f32 to vector<16x128xf32>
    %c0 = arith.constant 0 : index
    %c0_0 = arith.constant 0 : index
    %2 = vector.load %arg12[%c0, %c0_0] : memref<16x128xf32, #tpu.memory_space<vmem>>, vector<16x128xf32>
    tpu.vector_store %arg12[%c0, %c0_0], %1 {strides = array<i32>} : memref<16x128xf32, #tpu.memory_space<vmem>>, vector<16x128xf32>,
    %cst_1 = arith.constant 0.000000e+00 : f32
    %3 = vector.broadcast %cst_1 : f32 to vector<16x1xf32>
    %c0_2 = arith.constant 0 : index
    %c0_3 = arith.constant 0 : index
    %4 = vector.load %arg13[%c0_2, %c0_3] : memref<16x1xf32, #tpu.memory_space<vmem>>, vector<16x1xf32>
    tpu.vector_store %arg13[%c0_2, %c0_3], %3 {strides = array<i32>} : memref<16x1xf32, #tpu.memory_space<vmem>>, vector<16x1xf32>,
    %5 = tpu.iota {dimensions = array<i32: 0>} : vector<8x1xi32>
    %6 = arith.index_cast %arg0 : i32 to index
    %7 = memref.load %arg3[%6] : memref<1xi32, #tpu.memory_space<smem>>
    %8 = arith.index_cast %arg0 : i32 to index
    %9 = memref.load %arg4[%8] : memref<1xi32, #tpu.memory_space<smem>>
    %c0_i32 = arith.constant 0 : i32
    %10 = arith.subi %9, %7 : i32
    %11 = arith.addi %7, %10 : i32
    %c1_i32 = arith.constant 1 : i32
    scf.for %arg14 = %7 to %11 step %c1_i32  : i32 {
      %37 = arith.index_cast %arg14 : i32 to index
      %38 = memref.load %arg1[%37] : memref<32xi32, #tpu.memory_space<smem>>
      %39 = arith.index_cast %arg14 : i32 to index
      %40 = memref.load %arg2[%39] : memref<32xi32, #tpu.memory_space<smem>>
      %c3_i32 = arith.constant 3 : i32
      %41 = arith.shrsi %38, %c3_i32 : i32
      %c8_i32 = arith.constant 8 : i32
      %42 = arith.muli %41, %c8_i32 : i32
      %43 = tpu.assume_multiple %42, 8 : i32
      %44 = arith.index_cast %43 : i32 to index
      %c0_26 = arith.constant 0 : index
      %45 = vector.load %arg5[%44, %c0_26] : memref<16x128xf32, #tpu.memory_space<vmem>>, vector<8x128xf32>
      %c7_i32 = arith.constant 7 : i32
      %46 = arith.andi %38, %c7_i32 : i32
      %47 = vector.broadcast %46 : i32 to vector<8x1xi32>
      %48 = arith.cmpi eq, %5, %47 : vector<8x1xi32>
      %cst_27 = arith.constant 0.000000e+00 : f32
      %49 = vector.shape_cast %48 : vector<8x1xi1> to vector<8x1xi1>
      %50 = vector.broadcast %49 : vector<8x1xi1> to vector<8x128xi1>
      %51 = vector.broadcast %cst_27 : f32 to vector<8x128xf32>
      %52 = arith.select %50, %45, %51 : vector<8x128xi1>, vector<8x128xf32>
      %cst_28 = arith.constant dense<0.000000e+00> : vector<128xf32>
      %53 = vector.multi_reduction <add>, %52, %cst_28 [0] : vector<8x128xf32> to vector<128xf32>
      %54 = vector.shape_cast %53 : vector<128xf32> to vector<1x128xf32>
      %55 = arith.subi %40, %0 : i32
      %c3_i32_29 = arith.constant 3 : i32
      %56 = arith.shrsi %55, %c3_i32_29 : i32
      %c8_i32_30 = arith.constant 8 : i32
      %57 = arith.muli %56, %c8_i32_30 : i32
      %58 = tpu.assume_multiple %57, 8 : i32
      %c7_i32_31 = arith.constant 7 : i32
      %59 = arith.andi %55, %c7_i32_31 : i32
      %60 = vector.broadcast %59 : i32 to vector<8x1xi32>
      %61 = arith.cmpi eq, %5, %60 : vector<8x1xi32>
      %62 = arith.index_cast %58 : i32 to index
      %c0_32 = arith.constant 0 : index
      %63 = vector.load %arg12[%62, %c0_32] : memref<16x128xf32, #tpu.memory_space<vmem>>, vector<8x128xf32>
      %cst_33 = arith.constant 0.000000e+00 : f32
      %64 = vector.shape_cast %61 : vector<8x1xi1> to vector<8x1xi1>
      %65 = vector.broadcast %64 : vector<8x1xi1> to vector<8x128xi1>
      %66 = vector.shape_cast %54 : vector<1x128xf32> to vector<1x128xf32>
      %67 = vector.broadcast %66 : vector<1x128xf32> to vector<8x128xf32>
      %68 = vector.broadcast %cst_33 : f32 to vector<8x128xf32>
      %69 = arith.select %65, %67, %68 : vector<8x128xi1>, vector<8x128xf32>
      %70 = arith.addf %63, %69 : vector<8x128xf32>
      %71 = arith.index_cast %58 : i32 to index
      %c0_34 = arith.constant 0 : index
      %72 = vector.load %arg12[%71, %c0_34] : memref<16x128xf32, #tpu.memory_space<vmem>>, vector<8x128xf32>
      tpu.vector_store %arg12[%71, %c0_34], %70 {strides = array<i32>} : memref<16x128xf32, #tpu.memory_space<vmem>>, vector<8x128xf32>,
      %73 = arith.index_cast %58 : i32 to index
      %c0_35 = arith.constant 0 : index
      %74 = vector.load %arg13[%73, %c0_35] : memref<16x1xf32, #tpu.memory_space<vmem>>, vector<8x1xf32>
      %cst_36 = arith.constant 1.000000e+00 : f32
      %cst_37 = arith.constant 0.000000e+00 : f32
      %75 = vector.broadcast %cst_36 : f32 to vector<8x1xf32>
      %76 = vector.broadcast %cst_37 : f32 to vector<8x1xf32>
      %77 = arith.select %61, %75, %76 : vector<8x1xi1>, vector<8x1xf32>
      %78 = arith.addf %74, %77 : vector<8x1xf32>
      %79 = arith.index_cast %58 : i32 to index
      %c0_38 = arith.constant 0 : index
      %80 = vector.load %arg13[%79, %c0_38] : memref<16x1xf32, #tpu.memory_space<vmem>>, vector<8x1xf32>
      tpu.vector_store %arg13[%79, %c0_38], %78 {strides = array<i32>} : memref<16x1xf32, #tpu.memory_space<vmem>>, vector<8x1xf32>,
    }
    %c0_4 = arith.constant 0 : index
    %c0_5 = arith.constant 0 : index
    %12 = vector.load %arg12[%c0_4, %c0_5] : memref<16x128xf32, #tpu.memory_space<vmem>>, vector<16x128xf32>
    %c0_6 = arith.constant 0 : index
    %c0_7 = arith.constant 0 : index
    %13 = vector.load %arg13[%c0_6, %c0_7] : memref<16x1xf32, #tpu.memory_space<vmem>>, vector<16x1xf32>
    %cst_8 = arith.constant 1.000000e+00 : f32
    %14 = vector.broadcast %cst_8 : f32 to vector<16x1xf32>
    %15 = arith.maximumf %13, %14 : vector<16x1xf32>
    %16 = vector.broadcast %15 : vector<16x1xf32> to vector<16x128xf32>
    %17 = arith.divf %12, %16 : vector<16x128xf32>
    %18 = tpu.assume_multiple %0, 8 : i32
    %19 = arith.index_cast %18 : i32 to index
    %c0_9 = arith.constant 0 : index
    %20 = vector.load %arg5[%19, %c0_9] : memref<16x128xf32, #tpu.memory_space<vmem>>, vector<16x128xf32>
    %c0_10 = arith.constant 0 : index
    %c0_11 = arith.constant 0 : index
    %21 = vector.load %arg6[%c0_10, %c0_11] : memref<128x128xf32, #tpu.memory_space<vmem>>, vector<128x128xf32>
    %cst_12 = arith.constant dense<0.000000e+00> : vector<16x128xf32>
    %22 = tpu.matmul %20, %21, %cst_12 {dimension_numbers = #tpu.dot_dimension_numbers<[1], [0], [0], [1], [0, 0, 1, 1], [], []>} : vector<16x128xf32>, vector<128x128xf32>, vector<16x128xf32> -> vector<16x128xf32>
    %c0_13 = arith.constant 0 : index
    %c0_14 = arith.constant 0 : index
    %23 = vector.load %arg7[%c0_13, %c0_14] : memref<128x128xf32, #tpu.memory_space<vmem>>, vector<128x128xf32>
    %cst_15 = arith.constant dense<0.000000e+00> : vector<16x128xf32>
    %24 = tpu.matmul %17, %23, %cst_15 {dimension_numbers = #tpu.dot_dimension_numbers<[1], [0], [0], [1], [0, 0, 1, 1], [], []>} : vector<16x128xf32>, vector<128x128xf32>, vector<16x128xf32> -> vector<16x128xf32>
    %25 = arith.addf %22, %24 : vector<16x128xf32>
    %c0_16 = arith.constant 0 : index
    %c0_17 = arith.constant 0 : index
    %26 = vector.load %arg8[%c0_16, %c0_17] : memref<1x128xf32, #tpu.memory_space<vmem>>, vector<1x128xf32>
    %27 = vector.broadcast %26 : vector<1x128xf32> to vector<16x128xf32>
    %28 = arith.addf %25, %27 : vector<16x128xf32>
    %cst_18 = arith.constant 0.000000e+00 : f32
    %29 = vector.broadcast %cst_18 : f32 to vector<16x128xf32>
    %30 = arith.maximumf %28, %29 : vector<16x128xf32>
    %c0_19 = arith.constant 0 : index
    %c0_20 = arith.constant 0 : index
    %31 = vector.load %arg9[%c0_19, %c0_20] : memref<128x128xf32, #tpu.memory_space<vmem>>, vector<128x128xf32>
    %cst_21 = arith.constant dense<0.000000e+00> : vector<16x128xf32>
    %32 = tpu.matmul %30, %31, %cst_21 {dimension_numbers = #tpu.dot_dimension_numbers<[1], [0], [0], [1], [0, 0, 1, 1], [], []>} : vector<16x128xf32>, vector<128x128xf32>, vector<16x128xf32> -> vector<16x128xf32>
    %c0_22 = arith.constant 0 : index
    %c0_23 = arith.constant 0 : index
    %33 = vector.load %arg10[%c0_22, %c0_23] : memref<1x128xf32, #tpu.memory_space<vmem>>, vector<1x128xf32>
    %34 = vector.broadcast %33 : vector<1x128xf32> to vector<16x128xf32>
    %35 = arith.addf %32, %34 : vector<16x128xf32>
    %c0_24 = arith.constant 0 : index
    %c0_25 = arith.constant 0 : index
    %36 = vector.load %arg11[%c0_24, %c0_25] : memref<16x128xf32, #tpu.memory_space<vmem>>, vector<16x128xf32>
    tpu.vector_store %arg11[%c0_24, %c0_25], %35 {strides = array<i32>} : memref<16x128xf32, #tpu.memory_space<vmem>>, vector<16x128xf32>,
    return
  }
  func.func @transform_0(%arg0: i32, %arg1: memref<32xi32, #tpu.memory_space<smem>>, %arg2: memref<32xi32, #tpu.memory_space<smem>>, %arg3: memref<1xi32, #tpu.memory_space<smem>>, %arg4: memref<1xi32, #tpu.memory_space<smem>>) -> (i32, i32) {
    %c0_i32 = arith.constant 0 : i32
    %c0_i32_0 = arith.constant 0 : i32
    %c0_i32_1 = arith.constant 0 : i32
    return %c0_i32, %c0_i32_0 : i32, i32
  }
  func.func @transform_1(%arg0: i32, %arg1: memref<32xi32, #tpu.memory_space<smem>>, %arg2: memref<32xi32, #tpu.memory_space<smem>>, %arg3: memref<1xi32, #tpu.memory_space<smem>>, %arg4: memref<1xi32, #tpu.memory_space<smem>>) -> (i32, i32) {
    %c0_i32 = arith.constant 0 : i32
    %c0_i32_0 = arith.constant 0 : i32
    %c0_i32_1 = arith.constant 0 : i32
    return %c0_i32, %c0_i32_0 : i32, i32
  }
  func.func @transform_2(%arg0: i32, %arg1: memref<32xi32, #tpu.memory_space<smem>>, %arg2: memref<32xi32, #tpu.memory_space<smem>>, %arg3: memref<1xi32, #tpu.memory_space<smem>>, %arg4: memref<1xi32, #tpu.memory_space<smem>>) -> (i32, i32) {
    %c0_i32 = arith.constant 0 : i32
    %c0_i32_0 = arith.constant 0 : i32
    %c0_i32_1 = arith.constant 0 : i32
    return %c0_i32, %c0_i32_0 : i32, i32
  }
  func.func @transform_3(%arg0: i32, %arg1: memref<32xi32, #tpu.memory_space<smem>>, %arg2: memref<32xi32, #tpu.memory_space<smem>>, %arg3: memref<1xi32, #tpu.memory_space<smem>>, %arg4: memref<1xi32, #tpu.memory_space<smem>>) -> (i32, i32) {
    %c0_i32 = arith.constant 0 : i32
    %c0_i32_0 = arith.constant 0 : i32
    %c0_i32_1 = arith.constant 0 : i32
    return %c0_i32, %c0_i32_0 : i32, i32
  }
  func.func @transform_4(%arg0: i32, %arg1: memref<32xi32, #tpu.memory_space<smem>>, %arg2: memref<32xi32, #tpu.memory_space<smem>>, %arg3: memref<1xi32, #tpu.memory_space<smem>>, %arg4: memref<1xi32, #tpu.memory_space<smem>>) -> (i32, i32) {
    %c0_i32 = arith.constant 0 : i32
    %c0_i32_0 = arith.constant 0 : i32
    %c0_i32_1 = arith.constant 0 : i32
    return %c0_i32, %c0_i32_0 : i32, i32
  }
  func.func @transform_5(%arg0: i32, %arg1: memref<32xi32, #tpu.memory_space<smem>>, %arg2: memref<32xi32, #tpu.memory_space<smem>>, %arg3: memref<1xi32, #tpu.memory_space<smem>>, %arg4: memref<1xi32, #tpu.memory_space<smem>>) -> (i32, i32) {
    %c0_i32 = arith.constant 0 : i32
    %c0_i32_0 = arith.constant 0 : i32
    %c0_i32_1 = arith.constant 0 : i32
    return %c0_i32, %c0_i32_0 : i32, i32
  }
  func.func @transform_6(%arg0: i32, %arg1: memref<32xi32, #tpu.memory_space<smem>>, %arg2: memref<32xi32, #tpu.memory_space<smem>>, %arg3: memref<1xi32, #tpu.memory_space<smem>>, %arg4: memref<1xi32, #tpu.memory_space<smem>>) -> (i32, i32) {
    %c0_i32 = arith.constant 0 : i32
    %c0_i32_0 = arith.constant 0 : i32
    return %arg0, %c0_i32 : i32, i32
  }
}

</mosaic_0001>

<bundles_post_ra>
// kernel: tpu_custom_call.1
= control target key start
LH: loop header
LB: loop body
LE: loop exit
PB: predicated region body
PF: predicated region fallthrough
CT: control target
= control target key end

     0   :  { %s1124_s0 = inlined_call_operand.vmem [shape: s32[32], index: 0, kind: input, shape index: {}]   ;;  %s1125_s2 = inlined_call_operand.<no memory space> [shape: s32[1], index: 2, kind: input, shape index: {}]   ;;  %s1126_s3 = inlined_call_operand.<no memory space> [shape: s32[1], index: 3, kind: input, shape index: {}]   ;;  %s1127_s4 = inlined_call_operand.hbm [shape: f32[16,128], index: 4, kind: input, shape index: {}]   ;;  %s1128_s5 = inlined_call_operand.hbm [shape: f32[128,128], index: 5, kind: input, shape index: {}]   ;;  %s1129_s6 = inlined_call_operand.hbm [shape: f32[128,128], index: 6, kind: input, shape index: {}]   ;;  %s1130_s7 = inlined_call_operand.vmem [shape: f32[1,128], index: 7, kind: input, shape index: {}]   ;;  %s1131_s8 = inlined_call_operand.hbm [shape: f32[128,128], index: 8, kind: input, shape index: {}]   ;;  %s1132_s9 = inlined_call_operand.vmem [shape: f32[1,128], index: 9, kind: input, shape index: {}]   ;;  %s1133_s10 = inlined_call_operand.hbm [shape: f32[16,128], index: 10, kind: output, shape index: {}]   ;;  %s1134_s1 = inlined_call_operand.vmem [shape: s32[32], index: 1, kind: input, shape index: {}]  }
   0x1   :  { %s15_s15 = sshll.u32 %s1124_s0, 4  ;;  %s19_s18 = sshll.u32 %s1134_s1, 4  ;;  %s16_s15 = int_to_ptr.vmem [resolvable:$true] %s15_s15  ;;  %s20_s18 = int_to_ptr.vmem [resolvable:$true] %s19_s18 }
   0x2   :  { %s779_s19 = scalar_lea.vmem %s16_s15, 16  ;;  %p784_p1 = scmp.lt.s32.totalorder %s16_s15, %s16_s15 }
   0x3   :  { %p780_p0 = scmp.ne.s32.totalorder %s16_s15, %s779_s19  ;;  %p785_p2 = scmp.lt.s32.totalorder %s779_s19, %s779_s19 }
   0x5   :  { %p786_p3 = por %p785_p2, %p784_p1 }
   0x7   :  { %p787_p4 = pnand %p786_p3, %p780_p0 }
   0x9   :  { %790 = shalt.err (!%p787_p4)  }
   0xa   :  { %s931_s20 = smov [#allocation5]   ;;  %s791_s21 = scalar_lea.vmem %s20_s18, 16 }
   0xb   :  { %18 = dma.vmem_to_smem %s16_s15, 16, %s931_s20, [#allocation4] }
   0xc   :  { %p792_p5 = scmp.ne.s32.totalorder %s20_s18, %s791_s21  ;;  %p796_p6 = scmp.lt.s32.totalorder %s20_s18, %s20_s18 }
   0xd   :  { %p797_p7 = scmp.lt.s32.totalorder %s791_s21, %s791_s21 }
   0xf   :  { %p798_p8 = por %p797_p7, %p796_p6 }
  0x11   :  { %p799_p9 = pnand %p798_p8, %p792_p5 }
  0x13   :  { %802 = shalt.err (!%p799_p9)  }
  0x14   :  { %s932_s0 = smov [#allocation6]  }
  0x15   :  { %22 = dma.vmem_to_smem %s20_s18, 16, %s932_s0, [#allocation4] }
  0x16   :  { %917 = dma.done.wait [#allocation4], 32 }
  0x17   :  { %918 = vsyncadd [#allocation4], 4294967264 }
  0x18   :  { %26 = sfence }
  0x19   :  { %27 = vsyncpa [#allocation10], 0 }
  0x1a   :  { %28 = vsyncpa [#allocation13], 0 }
  0x1b   :  { %29 = vsyncpa [#allocation16], 0 }
  0x1c   :  { %30 = vsyncpa [#allocation11], 0  ;;  %s933_s1 = smov [#allocation12]   ;;  %s934_s23 = smov [#allocation9]  }
  0x1d   :  { %s48_s22 = sshll.u32 %s933_s1, 4  ;;  %s36_s24 = sshll.u32 %s934_s23, 4  ;;  %s49_s22 = int_to_ptr.vmem [resolvable:$true] %s48_s22  ;;  %s1004_s24 = int_to_ptr.vmem [resolvable:$true] %s36_s24 }
  0x1e   :  { %s803_s27 = scalar_lea.hbm %s1128_s5, 2048 }
  0x1f   :  { %p804_p10 = scmp.ne.s32.totalorder %s1128_s5, %s803_s27  ;;  %p807_p11 = scmp.lt.u32.totalorder %s803_s27, %s1128_s5 }
  0x21   :  { %p809_p12 = pnand %p807_p11, %p804_p10 }
  0x23   :  { %812 = shalt.err (!%p809_p12)
}
  0x24   :  { %s813_s12 = scalar_lea.vmem %s49_s22, 2048  ;;  %p818_p0 = scmp.lt.s32.totalorder %s49_s22, %s49_s22 }
  0x25   :  { %p814_p13 = scmp.ne.s32.totalorder %s49_s22, %s813_s12  ;;  %p819_p1 = scmp.lt.s32.totalorder %s813_s12, %s813_s12 }
  0x27   :  { %p820_p2 = por %p819_p1, %p818_p0 }
  0x29   :  { %p821_p3 = pnand %p820_p2, %p814_p13 }
  0x2b   :  { %824 = shalt.err (!%p821_p3)
}
  0x2c   :  { %s935_s13 = smov 128   ;;  %s936_s14 = smov 8  }
  0x2d   :  { %54 = dma.hbm_to_vmem [thread:$0]  %s1128_s5, 2048, %s49_s22, [#allocation13], %s935_s13, %s935_s13, %s936_s14  }
  0x2e   :  { %s825_s19 = scalar_lea.hbm %s1127_s4, 256 }
  0x2f   :  { %p826_p4 = scmp.ne.s32.totalorder %s1127_s4, %s825_s19  ;;  %p829_p5 = scmp.lt.u32.totalorder %s825_s19, %s1127_s4 }
  0x31   :  { %p831_p6 = pnand %p829_p5, %p826_p4 }
  0x33   :  { %834 = shalt.err (!%p831_p6)
}
  0x34   :  { %s835_s23 = scalar_lea.vmem %s1004_s24, 256  ;;  %p840_p8 = scmp.lt.s32.totalorder %s1004_s24, %s1004_s24 }
  0x35   :  { %p836_p7 = scmp.ne.s32.totalorder %s1004_s24, %s835_s23  ;;  %p841_p9 = scmp.lt.s32.totalorder %s835_s23, %s835_s23 }
  0x37   :  { %p842_p10 = por %p841_p9, %p840_p8 }
  0x39   :  { %p843_p11 = pnand %p842_p10, %p836_p7 }
  0x3b   :  { %846 = shalt.err (!%p843_p11)
}
  0x3c   :  { %42 = dma.hbm_to_vmem [thread:$0]  %s1127_s4, 256, %s1004_s24, [#allocation10], %s935_s13, %s935_s13, %s936_s14  }
  0x3d   :  { %s937_s25 = smov [#allocation14]   ;;  %s938_s27 = smov [#allocation15]  }
  0x3e   :  { %s60_s26 = sshll.u32 %s937_s25, 4  ;;  %s74_s28 = sshll.u32 %s938_s27, 4  ;;  %s61_s26 = int_to_ptr.vmem [resolvable:$true] %s60_s26  ;;  %s1041_s28 = int_to_ptr.vmem [resolvable:$true] %s74_s28 }
  0x3f   :  { %s847_s11 = scalar_lea.hbm %s1129_s6, 2048 }
  0x40   :  { %p848_p12 = scmp.ne.s32.totalorder %s1129_s6, %s847_s11  ;;  %p851_p13 = scmp.lt.u32.totalorder %s847_s11, %s1129_s6 }
  0x42   :  { %p853_p0 = pnand %p851_p13, %p848_p12 }
  0x44   :  { %856 = shalt.err (!%p853_p0)
}
  0x45   :  { %s857_s4 = scalar_lea.vmem %s61_s26, 2048  ;;  %p862_p2 = scmp.lt.s32.totalorder %s61_s26, %s61_s26 }
  0x46   :  { %p858_p1 = scmp.ne.s32.totalorder %s61_s26, %s857_s4  ;;  %p863_p3 = scmp.lt.s32.totalorder %s857_s4, %s857_s4 }
  0x48   :  { %p864_p4 = por %p863_p3, %p862_p2 }
  0x4a   :  { %p865_p5 = pnand %p864_p4, %p858_p1 }
  0x4c   :  { %868 = shalt.err (!%p865_p5)
}
  0x4d   :  { %66 = dma.hbm_to_vmem [thread:$0]  %s1129_s6, 2048, %s61_s26, [#allocation13], %s935_s13, %s935_s13, %s936_s14  }
  0x4e   :  { %s869_s21 = scalar_lea.hbm %s1131_s8, 2048 }
  0x4f   :  { %p870_p6 = scmp.ne.s32.totalorder %s1131_s8, %s869_s21  ;;  %p873_p7 = scmp.lt.u32.totalorder %s869_s21, %s1131_s8 }
  0x51   :  { %p875_p8 = pnand %p873_p7, %p870_p6 }
  0x53   :  { %878 = shalt.err (!%p875_p8)
}
  0x54   :  { %s879_s22 = scalar_lea.vmem %s1041_s28, 2048  ;;  %p884_p10 = scmp.lt.s32.totalorder %s1041_s28, %s1041_s28 }
  0x55   :  { %p880_p9 = scmp.ne.s32.totalorder %s1041_s28, %s879_s22  ;;  %p885_p11 = scmp.lt.s32.totalorder %s879_s22, %s879_s22 }
  0x57   :  { %p886_p12 = por %p885_p11, %p884_p10 }
  0x59   :  { %p887_p13 = pnand %p886_p12, %p880_p9 }
  0x5b   :  { %890 = shalt.err (!%p887_p13)
}
  0x5c   :  { %80 = dma.hbm_to_vmem [thread:$0]  %s1131_s8, 2048, %s1041_s28, [#allocation16], %s935_s13, %s935_s13, %s936_s14  }
  0x5d   :  { %919 = dma.done.wait [#allocation10], 256  }
  0x5e   :  { %920 = vsyncadd [#allocation10], 4294967040 }
  0x5f   :  { %921 = dma.done.wait [#allocation13], 4096  }
  0x60   :  { %922 = vsyncadd [#allocation13], 4294963200 }
  0x61   :  { %923 = dma.done.wait [#allocation16], 2048  }
  0x62   :  { %924 = vsyncadd [#allocation16], 4294965248  ;;  %v101_v0 = vlaneseq  ;;  %vm98_vm0 = vcmask 7168   ;;  %v939_v1 = vmov 0.0   ;;  %p489_p0 = scmp.ge.s32.totalorder %s1125_s2, %s1126_s3 }
  0x63   :  { %96 = vst [vmem:[#allocation2] sm:$0xff] %v939_v1  ;;  %97 = vst [vmem:[#allocation2 + $0x8] sm:$0xff] %v939_v1 }
  0x64   :  { %99 = vst.msk [vmem:[#allocation3] sm:$0xff] %vm98_vm0, %v939_v1  ;;  %100 = vst.msk [vmem:[#allocation3 + $0x8] sm:$0xff] %vm98_vm0, %v939_v1  ;;  %v102_v2 = vshrl.u32 %v101_v0, 7  ;;  %490 = sbr.rel (%p489_p0) target bundleno = 134 (0x86), region = 65 }
  0x6b LB: > { %s111_s11 = sld [smem:[#allocation5 + %s929_s2]]  ;;  %v940_v9 = vmov 0.0   ;;  %s929_s2 = sphi %s1125_s2, %s108_s2  }
  0x6c   : > { %s112_s12 = sld [smem:[#allocation6 + %s929_s2]]  ;;  %s108_s2 = sadd.s32 1, %s929_s2  }
  0x6d   : > { %p107_p1 = scmp.ge.s32.totalorder %s108_s2, %s1126_s3 }
  0x71   : > { %s113_s15 = sshra.s32 %s111_s11, 3  ;;  %s117_s16 = sand.u32 7, %s111_s11 }
  0x72   : > { %s493_s17 = sshll.u32 %s113_s15, 3  ;;  %v118_v3 = vstv %s117_s16  ;;  %s130_s4 = sshra.s32 %s112_s12, 3 }
  0x73   : > { %vm119_vm1 = vcmp.eq.s32.totalorder %v102_v2, %v118_v3  ;;  %s494_s24 = sshll.u32 %s130_s4, 3  ;;  %s115_s18 = scalar_lea.vmem [#allocation9], %s493_s17 }
  0x74   : > { %v116_v4 = vld [vmem:[%s115_s18] sm:$0xff]  ;;  %s132_s19 = sand.u32 7, %s112_s12  ;;  %s142_s20 = scalar_lea.vmem [#allocation3], %s494_s24 }
  0x75   : > { %v122_v5 = vsel %vm119_vm1, %v116_v4, 0.0  ;;  %v133_v6 = vstv %s132_s19  ;;  %v143_v8 = vld [vmem:[%s142_s20] sm:$0xff]  ;;  %s135_s21 = scalar_lea.vmem [#allocation2], %s494_s24 }
  0x76   : > { %v123_v7 = vrot.slane %v122_v5, 4  ;;  %vm134_vm2 = vcmp.eq.s32.totalorder %v102_v2, %v133_v6  ;;  %v136_v17 = vld [vmem:[%s135_s21] sm:$0xff] }
  0x77   : > { %v144_v10 = vsel %vm134_vm2, 1.0, %v940_v9 }
  0x78   : > { %v124_v11 = vadd.f32 %v123_v7, %v122_v5  ;;  %v145_v12 = vadd.f32 %v144_v10, %v143_v8 }
  0x7a   : > { %v125_v13 = vrot.slane %v124_v11, 2  ;;  %146 = vst.msk [vmem:[%s142_s20] sm:$0xff] %vm98_vm0, %v145_v12 }
  0x7c   : > { %v126_v14 = vadd.f32 %v125_v13, %v124_v11 }
  0x7e   : > { %v127_v15 = vrot.slane %v126_v14, 1 }
  0x7f   :  { %110 = sbr.rel (!%p107_p1) target bundleno = 107 (0x6b), region = 71 }
  0x80   : > { %v128_v16 = vadd.f32 %v127_v15, %v126_v14 }
  0x82   : > { %v139_v18 = vsel %vm134_vm2, %v128_v16, 0.0 }
  0x83   : > { %v140_v19 = vadd.f32 %v139_v18, %v136_v17 }
  0x85   : > { %141 = vst [vmem:[%s135_s21] sm:$0xff] %v140_v19 }
  0x86 PF:  { %v149_v20 = vld [vmem:[#allocation3] sm:$0xff]  ;;  %v150_v21 = vld [vmem:[#allocation3 + $0x8] sm:$0xff]  ;;  %v941_v23 = vmov 0   ;;  %v188_v26 = vld [vmem:[#allocation14 + $0x10] sm:$0xff]  ;;  %s942_s22 = smov [#allocation17]  }
  0x87   :  { %v186_v22 = vld [vmem:[#allocation14] sm:$0xff]  ;;  %774 = vset.pattern.permute.xlu0 %v941_v23  ;;  %v151_v24 = vmax.f32 %v149_v20, 1.0  ;;  %v187_v25 = vld [vmem:[#allocation14 + $0x8] sm:$0xff]  ;;  %v189_v27 = vld [vmem:[#allocation14 + $0x18] sm:$0xff]  ;;  %v152_v30 = vmax.f32 %v150_v21, 1.0  ;;  %s468_s6 = sshll.u32 %s942_s22, 4  ;;  %s469_s6 = int_to_ptr.vmem [resolvable:$true] %s468_s6 }
  0x88   :  { %v656_v28 = vpack.c.bf16 %v187_v25, %v186_v22  ;;  %v660_v29 = vpack.c.bf16 %v189_v27, %v188_v26  ;;  %v190_v31 = vld [vmem:[#allocation14 + $0x20] sm:$0xff]  ;;  %v191_v32 = vld [vmem:[#allocation14 + $0x28] sm:$0xff]  ;;  %v192_v34 = vld [vmem:[#allocation14 + $0x30] sm:$0xff]  ;;  %p896_p3 = scmp.lt.s32.totalorder %s469_s6, %s469_s6 }
  0x89   :  { %155 = vperm.xlu0 %774, %v151_v24   ;;  %v664_v33 = vpack.c.bf16 %v191_v32, %v190_v31  ;;  %v193_v35 = vld [vmem:[#allocation14 + $0x38] sm:$0xff]  ;;  %v194_v37 = vld [vmem:[#allocation14 + $0x40] sm:$0xff]  ;;  %v195_v38 = vld [vmem:[#allocation14 + $0x48] sm:$0xff] }
  0x8a   :  { %657 = vmatprep.subr.bf16.mxu0 %v656_v28  ;;  %v668_v36 = vpack.c.bf16 %v193_v35, %v192_v34  ;;  %v672_v39 = vpack.c.bf16 %v195_v38, %v194_v37  ;;  %v196_v40 = vld [vmem:[#allocation14 + $0x50] sm:$0xff]  ;;  %v197_v41 = vld [vmem:[#allocation14 + $0x58] sm:$0xff]  ;;  %v198_v43 = vld [vmem:[#allocation14 + $0x60] sm:$0xff] }
  0x8b   :  { %659 = vmatpush3.bf16.msra.mxu0 %v656_v28  ;;  %v676_v42 = vpack.c.bf16 %v197_v41, %v196_v40  ;;  %v199_v44 = vld [vmem:[#allocation14 + $0x68] sm:$0xff]  ;;  %v200_v46 = vld [vmem:[#allocation14 + $0x70] sm:$0xff]  ;;  %v201_v47 = vld [vmem:[#allocation14 + $0x78] sm:$0xff] }
  0x8c   :  { %661 = vmatprep.subr.bf16.mxu0 %v660_v29  ;;  %v680_v45 = vpack.c.bf16 %v199_v44, %v198_v43  ;;  %v684_v48 = vpack.c.bf16 %v201_v47, %v200_v46  ;;  %v170_v49 = vld [vmem:[#allocation12] sm:$0xff]  ;;  %v171_v50 = vld [vmem:[#allocation12 + $0x8] sm:$0xff]  ;;  %v365_v54 = vld [vmem:[#allocation15 + $0x10] sm:$0xff] }
  0x8d   :  { %160 = vperm.xlu0 %774, %v152_v30   ;;  %v688_v51 = vpack.c.bf16 %v171_v50, %v170_v49  ;;  %v363_v52 = vld [vmem:[#allocation15] sm:$0xff]  ;;  %v364_v53 = vld [vmem:[#allocation15 + $0x8] sm:$0xff]  ;;  %v366_v56 = vld [vmem:[#allocation15 + $0x18] sm:$0xff] }
  0x8e   :  { %v720_v55 = vpack.c.bf16 %v364_v53, %v363_v52  ;;  %v724_v57 = vpack.c.bf16 %v366_v56, %v365_v54  ;;  %v367_v58 = vld [vmem:[#allocation15 + $0x20] sm:$0xff]  ;;  %v368_v59 = vld [vmem:[#allocation15 + $0x28] sm:$0xff]  ;;  %v369_v61 = vld [vmem:[#allocation15 + $0x30] sm:$0xff] }
  0x8f   :  { %663 = vmatpush3.bf16.msra.mxu0 %v660_v29  ;;  %v728_v60 = vpack.c.bf16 %v368_v59, %v367_v58  ;;  %v370_v62 = vld [vmem:[#allocation15 + $0x38] sm:$0xff]  ;;  %v371_v0 = vld [vmem:[#allocation15 + $0x40] sm:$0xff]  ;;  %v372_v1 = vld [vmem:[#allocation15 + $0x48] sm:$0xff] }
  0x90   :  { %665 = vmatprep.subr.bf16.mxu0 %v664_v33  ;;  %721 = vmatprep.subr.bf16.mxu1 %v720_v55  ;;  %v732_v63 = vpack.c.bf16 %v370_v62, %v369_v61  ;;  %v736_v2 = vpack.c.bf16 %v372_v1, %v371_v0  ;;  %v373_v3 = vld [vmem:[#allocation15 + $0x50] sm:$0xff]  ;;  %v374_v4 = vld [vmem:[#allocation15 + $0x58] sm:$0xff]  ;;  %v375_v6 = vld [vmem:[#allocation15 + $0x60] sm:$0xff] }
  0x91   :  { %723 = vmatpush3.bf16.msra.mxu1 %v720_v55  ;;  %v740_v5 = vpack.c.bf16 %v374_v4, %v373_v3  ;;  %v376_v7 = vld [vmem:[#allocation15 + $0x68] sm:$0xff]  ;;  %v147_v11 = vld [vmem:[#allocation2] sm:$0xff]  ;;  %v148_v14 = vld [vmem:[#allocation2 + $0x8] sm:$0xff] }
  0x92   :  { %725 = vmatprep.subr.bf16.mxu1 %v724_v57  ;;  %v744_v8 = vpack.c.bf16 %v376_v7, %v375_v6  ;;  %v172_v15 = vld [vmem:[#allocation12 + $0x10] sm:$0xff]  ;;  %v173_v16 = vld [vmem:[#allocation12 + $0x18] sm:$0xff]  ;;  %v174_v21 = vld [vmem:[#allocation12 + $0x20] sm:$0xff] }
  0x93   :  { %667 = vmatpush3.bf16.msra.mxu0 %v664_v33  ;;  %v692_v19 = vpack.c.bf16 %v173_v16, %v172_v15  ;;  %v168_v20 = vld [vmem:[#allocation9] sm:$0xff]  ;;  %v175_v22 = vld [vmem:[#allocation12 + $0x28] sm:$0xff]  ;;  %v177_v25 = vld [vmem:[#allocation12 + $0x38] sm:$0xff] }
  0x94   :  { %669 = vmatprep.subr.bf16.mxu0 %v668_v36  ;;  %v696_v23 = vpack.c.bf16 %v175_v22, %v174_v21  ;;  %v176_v24 = vld [vmem:[#allocation12 + $0x30] sm:$0xff]  ;;  %v178_v27 = vld [vmem:[#allocation12 + $0x40] sm:$0xff]  ;;  %v179_v28 = vld [vmem:[#allocation12 + $0x48] sm:$0xff] }
  0x95   :  { %727 = vmatpush3.bf16.msra.mxu1 %v724_v57  ;;  %v700_v26 = vpack.c.bf16 %v177_v25, %v176_v24  ;;  %v704_v29 = vpack.c.bf16 %v179_v28, %v178_v27  ;;  %v180_v30 = vld [vmem:[#allocation12 + $0x50] sm:$0xff]  ;;  %v181_v31 = vld [vmem:[#allocation12 + $0x58] sm:$0xff]  ;;  %v182_v33 = vld [vmem:[#allocation12 + $0x60] sm:$0xff] }
  0x96   :  { %729 = vmatprep.subr.bf16.mxu1 %v728_v60  ;;  %v708_v32 = vpack.c.bf16 %v181_v31, %v180_v30  ;;  %v183_v34 = vld [vmem:[#allocation12 + $0x68] sm:$0xff]  ;;  %v185_v37 = vld [vmem:[#allocation12 + $0x78] sm:$0xff]  ;;  %v377_v40 = vld [vmem:[#allocation15 + $0x70] sm:$0xff] }
  0x97   :  { %671 = vmatpush3.bf16.msra.mxu0 %v668_v36  ;;  %v712_v35 = vpack.c.bf16 %v183_v34, %v182_v33  ;;  %v184_v36 = vld [vmem:[#allocation12 + $0x70] sm:$0xff]  ;;  %v378_v41 = vld [vmem:[#allocation15 + $0x78] sm:$0xff] }
  0x98   :  { %673 = vmatprep.subr.bf16.mxu0 %v672_v39  ;;  %v716_v38 = vpack.c.bf16 %v185_v37, %v184_v36  ;;  %v495_v43 = vld [vmem:[%s1130_s7] ss:$0 sm:$0xff]  ;;  %s891_s7 = scalar_lea.vmem %s469_s6, 256 }
  0x99   :  { %731 = vmatpush3.bf16.msra.mxu1 %v728_v60  ;;  %v496_v50 = vld [vmem:[%s1132_s9] ss:$0 sm:$0xff]  ;;  %p892_p2 = scmp.ne.s32.totalorder %s469_s6, %s891_s7  ;;  %p897_p4 = scmp.lt.s32.totalorder %s891_s7, %s891_s7 }
  0x9a   :  { %733 = vmatprep.subr.bf16.mxu1 %v732_v63 }
  0x9b   :  { %675 = vmatpush3.bf16.msra.mxu0 %v672_v39  ;;  %v169_v39 = vld [vmem:[#allocation9 + $0x8] sm:$0xff]  ;;  %p898_p5 = por %p897_p4, %p896_p3 }
  0x9c   :  { %677 = vmatprep.subr.bf16.mxu0 %v676_v42 }
  0x9d   :  { %735 = vmatpush3.bf16.msra.mxu1 %v732_v63  ;;  %p899_p6 = pnand %p898_p5, %p892_p2 }
  0x9e   :  { %737 = vmatprep.subr.bf16.mxu1 %v736_v2 }
  0x9f   :  { %679 = vmatpush3.bf16.msra.mxu0 %v676_v42  ;;  %v748_v42 = vpack.c.bf16 %v378_v41, %v377_v40 }
  0xa0   :  { %681 = vmatprep.subr.bf16.mxu0 %v680_v45 }
  0xa1   :  { %739 = vmatpush3.bf16.msra.mxu1 %v736_v2 }
  0xa2   :  { %741 = vmatprep.subr.bf16.mxu1 %v740_v5 }
  0xa3   :  { %683 = vmatpush3.bf16.msra.mxu0 %v680_v45 }
  0xa4   :  { %685 = vmatprep.subr.bf16.mxu0 %v684_v48 }
  0xa5   :  { %743 = vmatpush3.bf16.msra.mxu1 %v740_v5 }
  0xa6   :  { %745 = vmatprep.subr.bf16.mxu1 %v744_v8 }
  0xa7   :  { %687 = vmatpush3.bf16.msra.mxu0 %v684_v48 }
  0xa8   :  { %689 = vmatprep.subr.bf16.mxu0 %v688_v51 }
  0xa9   :  { %747 = vmatpush3.bf16.msra.mxu1 %v744_v8 }
  0xaa   :  { %749 = vmatprep.subr.bf16.mxu1 %v748_v42 }
  0xad   :  { %751 = vmatpush3.bf16.msra.mxu1 %v748_v42 }
 0x108   :  { %v156_v9 = vpop.permute.xlu0 %155 }
 0x109   :  { %775 = vrcp.f32 %v156_v9 }
 0x10c   :  { %v161_v10 = vpop.permute.xlu0 %160 }
 0x10d   :  { %777 = vrcp.f32 %v161_v10 }
 0x113   :  { %v776_v12 = vpop.eup %775 }
 0x114   :  { %v164_v13 = vmul.f32 %v776_v12, %v147_v11 }
 0x116   :  { %583 = vmatprep.mubr.f32.mxu0 %v164_v13 }
 0x117   :  { %v778_v17 = vpop.eup %777 }
 0x118   :  { %v166_v18 = vmul.f32 %v778_v17, %v148_v14 }
 0x11a   :  { %584 = vmatmul.mubr.f32.vlgmr.msra.gmra.mrb[0].mxu0 %v166_v18 }
 0x11b   :  { %691 = vmatpush3.bf16.msra.mxu0 %v688_v51  ;;  %618 = vmatprep.mubr.f32.mxu0 %v168_v20 }
 0x11c   :  { %693 = vmatprep.subr.bf16.mxu0 %v692_v19 }
 0x11f   :  { %695 = vmatpush3.bf16.msra.mxu0 %v692_v19 }
 0x120   :  { %697 = vmatprep.subr.bf16.mxu0 %v696_v23 }
 0x123   :  { %699 = vmatpush3.bf16.msra.mxu0 %v696_v23 }
 0x124   :  { %701 = vmatprep.subr.bf16.mxu0 %v700_v26 }
 0x127   :  { %703 = vmatpush3.bf16.msra.mxu0 %v700_v26 }
 0x128   :  { %705 = vmatprep.subr.bf16.mxu0 %v704_v29 }
 0x12b   :  { %707 = vmatpush3.bf16.msra.mxu0 %v704_v29 }
 0x12c   :  { %709 = vmatprep.subr.bf16.mxu0 %v708_v32 }
 0x12f   :  { %711 = vmatpush3.bf16.msra.mxu0 %v708_v32 }
 0x130   :  { %713 = vmatprep.subr.bf16.mxu0 %v712_v35 }
 0x133   :  { %715 = vmatpush3.bf16.msra.mxu0 %v712_v35 }
 0x134   :  { %717 = vmatprep.subr.bf16.mxu0 %v716_v38 }
 0x137   :  { %719 = vmatpush3.bf16.msra.mxu0 %v716_v38 }
 0x13a   :  { %619 = vmatmul.mubr.f32.vlgmr.msra.gmra.mrb[0].mxu0 %v169_v39 }
 0x20d   :  { %v620_v44 = vpop.f32.mrb[0].mxu0 }
 0x20e   :  { %v360_v45 = vadd.f32 %v620_v44, %v495_v43  ;;  %v343_v46 = vpop.f32.mrb[1].mxu0 }
 0x20f   :  { %v359_v47 = vadd.f32 %v495_v43, %v343_v46 }
 0x210   :  { %v362_v49 = vmax.f32 %v360_v45, 0.0 }
 0x211   :  { %v361_v48 = vmax.f32 %v359_v47, 0.0 }
 0x213   :  { %653 = vmatprep.mubr.f32.mxu1 %v361_v48 }
 0x214   :  { %654 = vmatmul.mubr.f32.vlgmr.msra.gmra.mrb[0].mxu1 %v362_v49 }
 0x2e7   :  { %v655_v51 = vpop.f32.mrb[0].mxu1 }
 0x2e8   :  { %v458_v52 = vadd.f32 %v655_v51, %v496_v50  ;;  %v452_v53 = vpop.f32.mrb[1].mxu1 }
 0x2e9   :  { %v453_v54 = vadd.f32 %v496_v50, %v452_v53 }
 0x2ea   :  { %462 = vst [vmem:[#allocation17 + $0x8] sm:$0xff] %v458_v52 }
 0x2eb   :  { %461 = vst [vmem:[#allocation17] sm:$0xff] %v453_v54 }
 0x2ec   :  { %902 = shalt.err (!%p899_p6)
}
 0x2ed   :  { %s903_s9 = scalar_lea.hbm %s1133_s10, 256 }
 0x2ee   :  { %p904_p7 = scmp.ne.s32.totalorder %s1133_s10, %s903_s9  ;;  %p907_p8 = scmp.lt.u32.totalorder %s903_s9, %s1133_s10 }
 0x2f0   :  { %p909_p9 = pnand %p907_p8, %p904_p7 }
 0x2f2   :  { %912 = shalt.err (!%p909_p9)
}
 0x2f3   :  { %474 = dma.vmem_to_hbm [thread:$0]  %s469_s6, 256, %s1133_s10, [#allocation11], %s935_s13, %s935_s13, %s936_s14  }
 0x2f4   :  { %925 = dma.done.wait [#allocation11], 256  }
 0x2f5   :  { %926 = vsyncadd [#allocation11], 4294967040 }
 0x2f6   :  { %478 = vsyncpa [#allocation10], 1 }
 0x2f7   :  { %479 = vsyncpa [#allocation13], 1 }
 0x2f8   :  { %480 = vsyncpa [#allocation16], 1 }
 0x2f9   :  { %481 = vsyncpa [#allocation11], 1 }

</bundles_post_ra>
